<compile_context>
chip_gen: v6e
topology: v6e:2x2x1
jax: 0.10.0
libtpu: 0.0.40
codegen_flags: <defaults>
</compile_context>

<pallas_src>
import functools

import jax
import jax.numpy as jnp
from jax.experimental import pallas as pl
from jax.experimental.pallas import tpu as pltpu


def _round_up(n, m):
    return ((n + m - 1) // m) * m


def critic_kernel(x_ref, u_ref, w1x_ref, w1u_ref, b1_ref,
                  w2_ref, b2_ref, w3_ref, b3_ref, o_ref):
    # In-kernel bf16 cast: the wrapper never materializes a bf16 copy in HBM.
    x = x_ref[...].astype(jnp.bfloat16)
    u = u_ref[...].astype(jnp.bfloat16)

    # fc1 without the concat: concat([x, u]) @ W1 == x @ W1[:xd] + u @ W1[xd:]
    h1 = (jnp.dot(x, w1x_ref[...], preferred_element_type=jnp.float32)
          + jnp.dot(u, w1u_ref[...], preferred_element_type=jnp.float32)
          + b1_ref[...])
    h1 = jnp.maximum(h1, 0.0)                                  # f32 VPU

    h2 = jnp.dot(h1.astype(jnp.bfloat16), w2_ref[...],
                 preferred_element_type=jnp.float32) + b2_ref[...]
    h2 = jnp.maximum(h2, 0.0)

    # fc3 as a VPU multiply + XLU lane reduction (w3 is a resident (1, H) f32
    # row).  An N=1 MXU matmul costs the same vmatmul pushes as N=128.
    q = jnp.sum(h2 * w3_ref[...], axis=-1, keepdims=True) + b3_ref[...]
    o_ref[...] = q.astype(o_ref.dtype)


def _pick_batch_tile(B, cap):
    """Batch tile: whole batch for tiny B, else ~2 balanced grid steps."""
    if B <= 32:
        return B                           # block dim == array dim (exempt from /8 rule)
    # Two steps feed both v7x TensorCores; cap keeps f32 intermediates small.
    return min(cap, _round_up(pl.cdiv(B, 2), 16))


@functools.partial(jax.jit, static_argnames=("block_b",))
def critic_forward(x, u, params, *, block_b=4096):
    """x: (B, x_dim) f32, u: (B, u_dim) f32. Returns (B, 1) f32 Q-values."""
    w1x, w1u, b1, w2, b2, w3_row, b3 = params
    B, x_dim = x.shape
    u_dim = u.shape[1]

    bt = _pick_batch_tile(B, block_b)
    grid = (pl.cdiv(B, bt),)               # last block may be partial: reads of
                                           # OOB rows are row-independent garbage,
                                           # writes past B are masked by Pallas.

    batch_spec = lambda d: pl.BlockSpec((bt, d), lambda i: (i, 0))
    resident = lambda s: pl.BlockSpec(s, lambda i: (0, 0))   # VMEM-resident

    return pl.pallas_call(
        critic_kernel,
        out_shape=jax.ShapeDtypeStruct((B, 1), jnp.float32),
        grid=grid,
        in_specs=[
            batch_spec(x_dim),            # x tile (f32, cast in-kernel)
            batch_spec(u_dim),            # u tile (f32, cast in-kernel)
            resident(w1x.shape),          # fc1 weight, x-facing rows (bf16)
            resident(w1u.shape),          # fc1 weight, u-facing rows (bf16)
            resident(b1.shape),           # (1, H) f32
            resident(w2.shape),           # (H, H) bf16
            resident(b2.shape),           # (1, H) f32
            resident(w3_row.shape),       # (1, H) f32 row for the lane reduce
            resident(b3.shape),           # (1, 1) f32
        ],
        out_specs=pl.BlockSpec((bt, 1), lambda i: (i, 0)),
        compiler_params=pltpu.CompilerParams(
            dimension_semantics=("parallel",)),   # shard batch tiles across TCs (v7x)
    )(x, u, w1x, w1u, b1, w2, b2, w3_row, b3)


def init_critic_params(key, x_dim, u_dim, hidden_dim):
    """PyTorch-style Linear init: U(-1/sqrt(fan_in), 1/sqrt(fan_in)).

    Weights stored (in_features, out_features) so the kernel computes x @ W + b
    (== PyTorch's x @ W.T).  fc1 is split row-wise into x- and u-facing halves.
    Returned in float32 (master copy)."""
    def linear(k, fan_in, fan_out):
        kw, kb = jax.random.split(k)
        bound = 1.0 / jnp.sqrt(fan_in)
        w = jax.random.uniform(kw, (fan_in, fan_out), jnp.float32, -bound, bound)
        b = jax.random.uniform(kb, (1, fan_out), jnp.float32, -bound, bound)
        return w, b

    k1, k2, k3 = jax.random.split(key, 3)
    w1, b1 = linear(k1, x_dim + u_dim, hidden_dim)
    w2, b2 = linear(k2, hidden_dim, hidden_dim)
    w3, b3 = linear(k3, hidden_dim, 1)
    return (w1[:x_dim], w1[x_dim:], b1, w2, b2, w3, b3)


def to_kernel_params(params_f32):
    """bf16 matmul weights, f32 biases; w3 flattened to an f32 (1, H) row."""
    w1x, w1u, b1, w2, b2, w3, b3 = params_f32
    return (w1x.astype(jnp.bfloat16), w1u.astype(jnp.bfloat16), b1,
            w2.astype(jnp.bfloat16), b2,
            jnp.reshape(w3, (1, -1)),     # (H, 1) -> (1, H), stays f32
            b3)


def critic_reference(x, u, params_f32):
    w1x, w1u, b1, w2, b2, w3, b3 = params_f32
    xu = jnp.concatenate([x, u], axis=-1)
    w1 = jnp.concatenate([w1x, w1u], axis=0)
    h1 = jnp.maximum(xu @ w1 + b1, 0.0)
    h2 = jnp.maximum(h1 @ w2 + b2, 0.0)
    return h2 @ w3 + b3


if __name__ == "__main__":
    key = jax.random.PRNGKey(0)
    # fc1 of the PyTorch module consumes concat([x, u], -1), so its
    # `state_dim` argument corresponds to x_dim + u_dim.
    x_dim, u_dim, hidden_dim = 12, 4, 128
    kx, ku, kp = jax.random.split(key, 3)
    params_f32 = init_critic_params(kp, x_dim, u_dim, hidden_dim)
    params = to_kernel_params(params_f32)

    # Small batch: single full block, grid=(1,).
    batch = 8
    x = jax.random.normal(kx, (batch, x_dim), jnp.float32)
    u = jax.random.normal(ku, (batch, u_dim), jnp.float32)
    q = critic_forward(x, u, params)
    jax.block_until_ready(q)
    q_ref = critic_reference(x, u, params_f32)
    assert q.shape == (batch, 1)
    assert jnp.allclose(q, q_ref, atol=2e-2, rtol=2e-2), (
        float(jnp.max(jnp.abs(q - q_ref))))

    # Slightly larger batch: exercises the 2-step grid + partial last block
    # (no wrapper pad) path.
    batch2 = 40
    x2 = jax.random.normal(kx, (batch2, x_dim), jnp.float32)
    u2 = jax.random.normal(ku, (batch2, u_dim), jnp.float32)
    q2 = critic_forward(x2, u2, params)
    jax.block_until_ready(q2)
    q2_ref = critic_reference(x2, u2, params_f32)
    assert q2.shape == (batch2, 1)
    assert jnp.allclose(q2, q2_ref, atol=2e-2, rtol=2e-2), (
        float(jnp.max(jnp.abs(q2 - q2_ref))))

    print("KERNEL_OK")
</pallas_src>

<mosaic_0001>
module attributes {stable_mosaic.version = 11 : i64} {
  func.func @critic_kernel(%arg0: i32, %arg1: memref<8x12xf32, #tpu.memory_space<vmem>>, %arg2: memref<8x4xf32, #tpu.memory_space<vmem>>, %arg3: memref<12x128xbf16, #tpu.memory_space<vmem>>, %arg4: memref<4x128xbf16, #tpu.memory_space<vmem>>, %arg5: memref<1x128xf32, #tpu.memory_space<vmem>>, %arg6: memref<128x128xbf16, #tpu.memory_space<vmem>>, %arg7: memref<1x128xf32, #tpu.memory_space<vmem>>, %arg8: memref<1x128xf32, #tpu.memory_space<vmem>>, %arg9: memref<1x1xf32, #tpu.memory_space<vmem>>, %arg10: memref<8x1xf32, #tpu.memory_space<vmem>>) attributes {dimension_semantics = [#tpu.dimension_semantics<parallel>], iteration_bounds = array<i64: 1>, scalar_prefetch = 0 : i64, scratch_operands = 0 : i64, tpu.core_type = #tpu.core_type<tc>, window_params = [{transform_indices = @transform_0, window_bounds = array<i64: 8, 12>}, {transform_indices = @transform_1, window_bounds = array<i64: 8, 4>}, {pipeline_mode = #tpu.pipeline_mode<synchronous>, transform_indices = @transform_2, window_bounds = array<i64: 12, 128>}, {pipeline_mode = #tpu.pipeline_mode<synchronous>, transform_indices = @transform_3, window_bounds = array<i64: 4, 128>}, {pipeline_mode = #tpu.pipeline_mode<synchronous>, transform_indices = @transform_4, window_bounds = array<i64: 1, 128>}, {pipeline_mode = #tpu.pipeline_mode<synchronous>, transform_indices = @transform_5, window_bounds = array<i64: 128, 128>}, {pipeline_mode = #tpu.pipeline_mode<synchronous>, transform_indices = @transform_6, window_bounds = array<i64: 1, 128>}, {pipeline_mode = #tpu.pipeline_mode<synchronous>, transform_indices = @transform_7, window_bounds = array<i64: 1, 128>}, {pipeline_mode = #tpu.pipeline_mode<synchronous>, transform_indices = @transform_8, window_bounds = array<i64: 1, 1>}, {transform_indices = @transform_9, window_bounds = array<i64: 8, 1>}]} {
    %c0 = arith.constant 0 : index
    %c0_0 = arith.constant 0 : index
    %0 = vector.load %arg1[%c0, %c0_0] : memref<8x12xf32, #tpu.memory_space<vmem>>, vector<8x12xf32>
    %1 = arith.truncf %0 : vector<8x12xf32> to vector<8x12xbf16>
    %c0_1 = arith.constant 0 : index
    %c0_2 = arith.constant 0 : index
    %2 = vector.load %arg2[%c0_1, %c0_2] : memref<8x4xf32, #tpu.memory_space<vmem>>, vector<8x4xf32>
    %3 = arith.truncf %2 : vector<8x4xf32> to vector<8x4xbf16>
    %c0_3 = arith.constant 0 : index
    %c0_4 = arith.constant 0 : index
    %4 = vector.load %arg3[%c0_3, %c0_4] : memref<12x128xbf16, #tpu.memory_space<vmem>>, vector<12x128xbf16>
    %cst = arith.constant dense<0.000000e+00> : vector<8x128xf32>
    %5 = tpu.matmul %1, %4, %cst {dimension_numbers = #tpu.dot_dimension_numbers<[1], [0], [0], [1], [0, 0, 1, 1], [], []>} : vector<8x12xbf16>, vector<12x128xbf16>, vector<8x128xf32> -> vector<8x128xf32>
    %c0_5 = arith.constant 0 : index
    %c0_6 = arith.constant 0 : index
    %6 = vector.load %arg4[%c0_5, %c0_6] : memref<4x128xbf16, #tpu.memory_space<vmem>>, vector<4x128xbf16>
    %cst_7 = arith.constant dense<0.000000e+00> : vector<8x128xf32>
    %7 = tpu.matmul %3, %6, %cst_7 {dimension_numbers = #tpu.dot_dimension_numbers<[1], [0], [0], [1], [0, 0, 1, 1], [], []>} : vector<8x4xbf16>, vector<4x128xbf16>, vector<8x128xf32> -> vector<8x128xf32>
    %8 = arith.addf %5, %7 : vector<8x128xf32>
    %c0_8 = arith.constant 0 : index
    %c0_9 = arith.constant 0 : index
    %9 = vector.load %arg5[%c0_8, %c0_9] : memref<1x128xf32, #tpu.memory_space<vmem>>, vector<1x128xf32>
    %10 = vector.broadcast %9 : vector<1x128xf32> to vector<8x128xf32>
    %11 = arith.addf %8, %10 : vector<8x128xf32>
    %cst_10 = arith.constant 0.000000e+00 : f32
    %12 = vector.broadcast %cst_10 : f32 to vector<8x128xf32>
    %13 = arith.maximumf %11, %12 : vector<8x128xf32>
    %14 = arith.truncf %13 : vector<8x128xf32> to vector<8x128xbf16>
    %c0_11 = arith.constant 0 : index
    %c0_12 = arith.constant 0 : index
    %15 = vector.load %arg6[%c0_11, %c0_12] : memref<128x128xbf16, #tpu.memory_space<vmem>>, vector<128x128xbf16>
    %cst_13 = arith.constant dense<0.000000e+00> : vector<8x128xf32>
    %16 = tpu.matmul %14, %15, %cst_13 {dimension_numbers = #tpu.dot_dimension_numbers<[1], [0], [0], [1], [0, 0, 1, 1], [], []>} : vector<8x128xbf16>, vector<128x128xbf16>, vector<8x128xf32> -> vector<8x128xf32>
    %c0_14 = arith.constant 0 : index
    %c0_15 = arith.constant 0 : index
    %17 = vector.load %arg7[%c0_14, %c0_15] : memref<1x128xf32, #tpu.memory_space<vmem>>, vector<1x128xf32>
    %18 = vector.broadcast %17 : vector<1x128xf32> to vector<8x128xf32>
    %19 = arith.addf %16, %18 : vector<8x128xf32>
    %cst_16 = arith.constant 0.000000e+00 : f32
    %20 = vector.broadcast %cst_16 : f32 to vector<8x128xf32>
    %21 = arith.maximumf %19, %20 : vector<8x128xf32>
    %c0_17 = arith.constant 0 : index
    %c0_18 = arith.constant 0 : index
    %22 = vector.load %arg8[%c0_17, %c0_18] : memref<1x128xf32, #tpu.memory_space<vmem>>, vector<1x128xf32>
    %23 = vector.broadcast %22 : vector<1x128xf32> to vector<8x128xf32>
    %24 = arith.mulf %21, %23 : vector<8x128xf32>
    %cst_19 = arith.constant dense<0.000000e+00> : vector<8xf32>
    %25 = vector.multi_reduction <add>, %24, %cst_19 [1] : vector<8x128xf32> to vector<8xf32>
    %26 = vector.shape_cast %25 : vector<8xf32> to vector<8x1xf32>
    %c0_20 = arith.constant 0 : index
    %c0_21 = arith.constant 0 : index
    %27 = vector.load %arg9[%c0_20, %c0_21] : memref<1x1xf32, #tpu.memory_space<vmem>>, vector<1x1xf32>
    %28 = vector.broadcast %27 : vector<1x1xf32> to vector<8x1xf32>
    %29 = arith.addf %26, %28 : vector<8x1xf32>
    %c0_22 = arith.constant 0 : index
    %c0_23 = arith.constant 0 : index
    %30 = vector.load %arg10[%c0_22, %c0_23] : memref<8x1xf32, #tpu.memory_space<vmem>>, vector<8x1xf32>
    tpu.vector_store %arg10[%c0_22, %c0_23], %29 {strides = array<i32>} : memref<8x1xf32, #tpu.memory_space<vmem>>, vector<8x1xf32>,
    return
  }
  func.func @transform_0(%arg0: i32) -> (i32, i32) {
    %c0_i32 = arith.constant 0 : i32
    %c0_i32_0 = arith.constant 0 : i32
    return %arg0, %c0_i32 : i32, i32
  }
  func.func @transform_1(%arg0: i32) -> (i32, i32) {
    %c0_i32 = arith.constant 0 : i32
    %c0_i32_0 = arith.constant 0 : i32
    return %arg0, %c0_i32 : i32, i32
  }
  func.func @transform_2(%arg0: i32) -> (i32, i32) {
    %c0_i32 = arith.constant 0 : i32
    %c0_i32_0 = arith.constant 0 : i32
    %c0_i32_1 = arith.constant 0 : i32
    return %c0_i32, %c0_i32_0 : i32, i32
  }
  func.func @transform_3(%arg0: i32) -> (i32, i32) {
    %c0_i32 = arith.constant 0 : i32
    %c0_i32_0 = arith.constant 0 : i32
    %c0_i32_1 = arith.constant 0 : i32
    return %c0_i32, %c0_i32_0 : i32, i32
  }
  func.func @transform_4(%arg0: i32) -> (i32, i32) {
    %c0_i32 = arith.constant 0 : i32
    %c0_i32_0 = arith.constant 0 : i32
    %c0_i32_1 = arith.constant 0 : i32
    return %c0_i32, %c0_i32_0 : i32, i32
  }
  func.func @transform_5(%arg0: i32) -> (i32, i32) {
    %c0_i32 = arith.constant 0 : i32
    %c0_i32_0 = arith.constant 0 : i32
    %c0_i32_1 = arith.constant 0 : i32
    return %c0_i32, %c0_i32_0 : i32, i32
  }
  func.func @transform_6(%arg0: i32) -> (i32, i32) {
    %c0_i32 = arith.constant 0 : i32
    %c0_i32_0 = arith.constant 0 : i32
    %c0_i32_1 = arith.constant 0 : i32
    return %c0_i32, %c0_i32_0 : i32, i32
  }
  func.func @transform_7(%arg0: i32) -> (i32, i32) {
    %c0_i32 = arith.constant 0 : i32
    %c0_i32_0 = arith.constant 0 : i32
    %c0_i32_1 = arith.constant 0 : i32
    return %c0_i32, %c0_i32_0 : i32, i32
  }
  func.func @transform_8(%arg0: i32) -> (i32, i32) {
    %c0_i32 = arith.constant 0 : i32
    %c0_i32_0 = arith.constant 0 : i32
    %c0_i32_1 = arith.constant 0 : i32
    return %c0_i32, %c0_i32_0 : i32, i32
  }
  func.func @transform_9(%arg0: i32) -> (i32, i32) {
    %c0_i32 = arith.constant 0 : i32
    %c0_i32_0 = arith.constant 0 : i32
    return %arg0, %c0_i32 : i32, i32
  }
}

</mosaic_0001>

<bundles_post_ra>
// kernel: critic_forward.1
= control target key start
LH: loop header
LB: loop body
LE: loop exit
PB: predicated region body
PF: predicated region fallthrough
CT: control target
= control target key end

     0   :  { %s488_s0 = inlined_call_operand.vmem [shape: f32[8,12], index: 0, kind: input, shape index: {}]   ;;  %s489_s1 = inlined_call_operand.vmem [shape: f32[8,4], index: 1, kind: input, shape index: {}]   ;;  %s490_s2 = inlined_call_operand.vmem [shape: bf16[12,128], index: 2, kind: input, shape index: {}]   ;;  %s491_s3 = inlined_call_operand.vmem [shape: bf16[4,128], index: 3, kind: input, shape index: {}]   ;;  %s492_s4 = inlined_call_operand.vmem [shape: f32[1,128], index: 4, kind: input, shape index: {}]   ;;  %s493_s5 = inlined_call_operand.hbm [shape: bf16[128,128], index: 5, kind: input, shape index: {}]   ;;  %s494_s6 = inlined_call_operand.vmem [shape: f32[1,128], index: 6, kind: input, shape index: {}]   ;;  %s495_s7 = inlined_call_operand.vmem [shape: f32[1,128], index: 7, kind: input, shape index: {}]   ;;  %s496_s8 = inlined_call_operand.<no memory space> [shape: f32[1,1], index: 8, kind: input, shape index: {}]   ;;  %s497_s9 = inlined_call_operand.vmem [shape: f32[8,1], index: 9, kind: output, shape index: {}]  }
   0x1   :  { %v14_v0 = vstv %s496_s8 }
   0x2   :  { %15 = vst [vmem:[#allocation2] sm:$0x1] %v14_v0 }
   0x3   :  { %16 = vsyncpa [#allocation4], 0  ;;  %s400_s11 = smov [#allocation3]  }
   0x4   :  { %s32_s12 = sshll.u32 %s400_s11, 4  ;;  %s33_s12 = int_to_ptr.vmem [resolvable:$true] %s32_s12 }
   0x5   :  { %s386_s13 = scalar_lea.vmem %s33_s12, 1024  ;;  %p391_p1 = scmp.lt.s32.totalorder %s33_s12, %s33_s12 }
   0x6   :  { %p387_p0 = scmp.ne.s32.totalorder %s33_s12, %s386_s13  ;;  %p392_p2 = scmp.lt.s32.totalorder %s386_s13, %s386_s13 }
   0x8   :  { %p393_p3 = por %p392_p2, %p391_p1 }
   0xa   :  { %p394_p4 = pnand %p393_p3, %p387_p0 }
   0xc   :  { %397 = shalt.err (!%p394_p4)
}
   0xd   :  { %s401_s14 = smov 64   ;;  %s402_s15 = smov 4  }
   0xe   :  { %38 = dma.hbm_to_vmem [thread:$0]  %s493_s5, 1024, %s33_s12, [#allocation4], %s401_s14, %s401_s14, %s402_s15  }
   0xf   :  { %398 = dma.done.wait [#allocation4], 1024  }
  0x10   :  { %399 = vsyncadd [#allocation4], 4294966272  ;;  %v403_v1 = vmov 0.0   ;;  %vm404_vm0 = vmmov 0   ;;  %vm60_vm1 = vcmask 1041408   ;;  %v51_v3 = vld [vmem:[%s489_s1] sm:$0xff] }
  0x11   :  { %332 = vmatprep.subr.bf16.mxu1 %v403_v1  ;;  %334 = vmatprep.mubr.msk.bf16.mxu1 %vm404_vm0, %v403_v1  ;;  %v55_v2 = vld [vmem:[%s491_s3] sm:$0x3]  ;;  %vm113_vm2 = vcmask 1045504   ;;  %v52_v5 = vpack.c.bf16 %v51_v3, %v51_v3  ;;  %vm56_vm3 = vcmask 31744   ;;  %v371_v9 = vld [vmem:[#allocation3 + $0x30] sm:$0xff]   ;;  %v372_v11 = vld [vmem:[#allocation3 + $0x28] sm:$0xff]  }
  0x12   :  { %344 = vmatprep.subr.bf16.mxu0 %v403_v1  ;;  %360 = vmatprep.mubr.msk.bf16.mxu0 %vm404_vm0, %v403_v1  ;;  %v62_v4 = vsel %vm60_vm1, %v55_v2, 0  ;;  %v369_v6 = vld [vmem:[%s490_s2] sm:$0x3f]   ;;  %vm109_vm4 = vcmask 97280   ;;  %v375_v15 = vld [vmem:[#allocation3 + $0x10] sm:$0xff]   ;;  %v376_v16 = vld [vmem:[#allocation3 + $0x8] sm:$0xff]  }
  0x13   :  { %333 = vmatpush3.bf16.msra.mxu1 %v62_v4  ;;  %v370_v7 = vld [vmem:[#allocation3 + $0x38] sm:$0xff]   ;;  %v115_v8 = vsel %vm113_vm2, %v369_v6, 0  ;;  %v373_v13 = vld [vmem:[#allocation3 + $0x20] sm:$0xff]   ;;  %vm297_vm5 = vcmask 7168  }
  0x14   :  { %338 = vmatprep.subr.bf16.mxu1 %v403_v1  ;;  %345 = vmatpush3.bf16.msra.mxu0 %v370_v7  ;;  %v49_v10 = vld [vmem:[%s488_s0] sm:$0xff] }
  0x15   :  { %346 = vmatprep.subr.bf16.mxu0 %v403_v1  ;;  %v50_v12 = vpack.c.bf16 %v49_v10, %v49_v10  ;;  %v374_v14 = vld [vmem:[#allocation3 + $0x18] sm:$0xff]   ;;  %v377_v17 = vld [vmem:[#allocation3] sm:$0xff]  }
  0x16   :  { %335 = vmatmul.mubr.msk.bf16.vlgmr.msra.gmra.mxu1 %vm56_vm3, %v52_v5  ;;  %v307_v23 = vld [vmem:[%s492_s4] ss:$0 sm:$0xff] }
  0x17   :  { %339 = vmatpush3.bf16.msra.mxu1 %v115_v8  ;;  %340 = vmatprep.mubr.msk.bf16.mxu1 %vm404_vm0, %v403_v1  ;;  %v308_v31 = vld [vmem:[%s494_s6] ss:$0 sm:$0xff] }
  0x18   :  { %347 = vmatpush3.bf16.msra.mxu0 %v371_v9  ;;  %v317_v35 = vld [vmem:[%s495_s7] ss:$0 sm:$0xff] }
  0x19   :  { %348 = vmatprep.subr.bf16.mxu0 %v403_v1  ;;  %v318_v40 = vld [vmem:[#allocation2] ss:$0 sm:$0xff] }
  0x1c   :  { %349 = vmatpush3.bf16.msra.mxu0 %v372_v11 }
  0x1d   :  { %350 = vmatprep.subr.bf16.mxu0 %v403_v1 }
  0x1e   :  { %341 = vmatmul.mubr.msk.bf16.vlgmr.msra.gmra.mxu1 %vm109_vm4, %v50_v12 }
  0x20   :  { %351 = vmatpush3.bf16.msra.mxu0 %v373_v13 }
  0x21   :  { %352 = vmatprep.subr.bf16.mxu0 %v403_v1 }
  0x24   :  { %353 = vmatpush3.bf16.msra.mxu0 %v374_v14 }
  0x25   :  { %354 = vmatprep.subr.bf16.mxu0 %v403_v1 }
  0x28   :  { %355 = vmatpush3.bf16.msra.mxu0 %v375_v15 }
  0x29   :  { %356 = vmatprep.subr.bf16.mxu0 %v403_v1 }
  0x2c   :  { %357 = vmatpush3.bf16.msra.mxu0 %v376_v16 }
  0x2d   :  { %358 = vmatprep.subr.bf16.mxu0 %v403_v1 }
  0x30   :  { %359 = vmatpush3.bf16.msra.mxu0 %v377_v17 }
  0xd6   :  { %v98_v18 = vpop.f32.mrf.mxu1 }
  0xd8   :  { %v336_v19 = vpop.f32.mrf.mxu1 }
  0xda   :  { %v101_v20 = vpop.f32.mrf.mxu1 }
  0xdc   :  { %v337_v21 = vpop.f32.mrf.mxu1 }
  0xde   :  { %v151_v22 = vpop.f32.mrf.mxu1 }
  0xdf   :  { %v152_v24 = vadd.f32 %v151_v22, %v98_v18 }
  0xe0   :  { %v342_v25 = vpop.f32.mrf.mxu1 }
  0xe1   :  { %v164_v26 = vadd.f32 %v307_v23, %v152_v24 }
  0xe2   :  { %v154_v27 = vpop.f32.mrf.mxu1 }
  0xe3   :  { %v165_v28 = vmax.f32 %v164_v26, 0.0 }
  0xe4   :  { %v343_v29 = vpop.f32.mrf.mxu1 }
  0xe5   :  { %v166_v30 = vpack.c.bf16 %v165_v28, %v165_v28 }
  0xe7   :  { %361 = vmatmul.mubr.bf16.vlgmr.msra.gmra.mxu0 %v166_v30 }
 0x1a7   :  { %v272_v32 = vpop.f32.mrf.mxu0 }
 0x1a8   :  { %v273_v33 = vadd.f32 %v308_v31, %v272_v32 }
 0x1a9   :  { %v362_v34 = vpop.f32.mrf.mxu0 }
 0x1aa   :  { %v278_v36 = vmax.f32 %v273_v33, 0.0 }
 0x1ab   :  { %v275_v37 = vpop.f32.mrf.mxu0 }
 0x1ac   :  { %v286_v38 = vmul.f32 %v317_v35, %v278_v36 }
 0x1ad   :  { %v363_v39 = vpop.f32.mrf.mxu0 }
 0x1ae   :  { %287 = vadd.xlane.f32.xlu0 %v286_v38 }
 0x237   :  { %v288_v41 = vpop.xlane.xlu0 %287 }
 0x238   :  { %v296_v42 = vadd.f32 %v318_v40, %v288_v41 }
 0x23a   :  { %298 = vst.msk [vmem:[%s497_s9] sm:$0xff] %vm297_vm5, %v296_v42 }
 0x23b   :  { %303 = vsyncpa [#allocation4], 1 }

</bundles_post_ra>
